<compile_context>
chip_gen: v7x
topology: tpu7x:2x2x1
jax: 0.10.0
libtpu: 0.0.40
codegen_flags: <defaults>
</compile_context>

<pallas_src>
import jax
import jax.numpy as jnp
import numpy as np
from jax.experimental import pallas as pl
from jax.experimental.pallas import tpu as pltpu


def _make_ldam_kernel(s: float, batch: int):
    """s and batch are Python scalars -> lowered as literals (no captured consts)."""

    def kernel(x_ref, side_ref, out_ref):
        # x_ref: [TB, C] logits (native dtype); side_ref: [TB, 4] f32 sideband
        x = x_ref[...].astype(jnp.float32)            # upcast in VMEM, not HBM
        side = side_ref[...]                          # [TB, 4] f32
        TB, C = x.shape

        tgt = side[:, 0:1].astype(jnp.int32)          # target class per row
        bm = side[:, 1:2]                             # m_list[target]
        zt = side[:, 2:3]                             # s * (x_t - m_list[target])
        w = side[:, 3:4]                              # weight[target] (or 1)

        # LDAM margin + scale: z = s * where(class == target, x - m, x)
        col = jax.lax.broadcasted_iota(jnp.int32, (TB, C), 1)
        mask = col == tgt
        z = jnp.where(mask, x - bm, x) * s            # [TB, C] f32

        # Numerically stable log-sum-exp; true-class term zt comes from wrapper.
        zmax = jnp.max(z, axis=1, keepdims=True)                      # XLU reduce 1
        sumexp = jnp.sum(jnp.exp(z - zmax), axis=1, keepdims=True)    # EUP + XLU reduce 2
        per_loss = jnp.log(sumexp) + zmax - zt                        # [TB, 1]

        # Mask rows beyond the true batch: the ragged final tile reads
        # unspecified VMEM (may be NaN), so zero BOTH per_loss*w and w.
        row = pl.program_id(0) * TB + jax.lax.broadcasted_iota(jnp.int32, (TB, 1), 0)
        valid = row < batch
        num = jnp.sum(jnp.where(valid, per_loss * w, 0.0))
        den = jnp.sum(jnp.where(valid, w, 0.0))

        # Lane-dense partial output: column 0 = num, column 1 = den.
        lane = jax.lax.broadcasted_iota(jnp.int32, (8, 128), 1)
        out_ref[0] = jnp.where(lane == 0, num, jnp.where(lane == 1, den, 0.0))

    return kernel


def _choose_tb(B: int, C: int, itemsize: int) -> int:
    """Row-tile size: few-MiB working set, <=1024 rows, >=2 tiles when B > 8."""
    c_lanes = ((C + 127) // 128) * 128
    # Per-row VMEM cost: double-buffered native-dtype input rows plus ~4 f32
    # [TB, C] temporaries (upcast, z, exp, mask) created in the body.
    per_row = c_lanes * (2 * itemsize + 4 * 4)
    target = 8 << 20                                   # ~8 MiB working set
    tb = max(8, min(1024, target // max(per_row, 1)))
    tb = (tb // 8) * 8
    # Never allocate a tile much larger than the batch itself.
    tb = min(tb, ((B + 7) // 8) * 8)
    # Split into >=2 grid steps when possible so v7x's 2nd TensorCore has work.
    if B > 8:
        half = (((B + 1) // 2 + 7) // 8) * 8
        tb = min(tb, half)
    return max(8, tb)


def ldam_loss(x, target, m_list, s=30.0, weight=None):
    """LDAM loss.  x: [B, C] logits (f32/bf16), target: [B] int, m_list: [C]."""
    B, C = x.shape
    s = float(s)

    tgt = target.astype(jnp.int32)
    m_f32 = m_list.astype(jnp.float32)
    bm = m_f32[tgt]                                                   # [B]
    # True-class logit gathered once (tiny); z_t = s*(x_t - m[target]).
    x_t = jnp.take_along_axis(x.astype(jnp.float32), tgt[:, None], axis=1)[:, 0]
    zt = s * (x_t - bm)                                               # [B]
    if weight is None:
        w_rows = jnp.ones((B,), jnp.float32)
    else:
        w_rows = weight.astype(jnp.float32)[tgt]

    # Single per-row sideband: [target, margin, z_t, weight]  -> one DMA/step.
    side = jnp.stack([tgt.astype(jnp.float32), bm, zt, w_rows], axis=1)  # [B, 4]

    itemsize = jnp.dtype(x.dtype).itemsize
    TB = _choose_tb(B, C, itemsize)
    num_tiles = pl.cdiv(B, TB)

    # VMEM budget: double-buffered native input tile + f32 temporaries,
    # clamped to [16, 32] MiB (stays within v7x's 64 MiB physical VMEM with
    # double-buffering headroom).
    c_lanes = ((C + 127) // 128) * 128
    work = TB * c_lanes * (2 * itemsize + 4 * 4) + (2 << 20)
    vmem_bytes = int(min(max(work, 16 << 20), 32 << 20))

    parts = pl.pallas_call(
        _make_ldam_kernel(s, B),
        out_shape=jax.ShapeDtypeStruct((num_tiles, 8, 128), jnp.float32),
        grid=(num_tiles,),
        in_specs=[
            pl.BlockSpec((TB, C), lambda i: (i, 0)),   # full class extent, no pad
            pl.BlockSpec((TB, 4), lambda i: (i, 0)),   # merged sideband
        ],
        out_specs=pl.BlockSpec((1, 8, 128), lambda i: (i, 0, 0)),
        compiler_params=pltpu.CompilerParams(
            dimension_semantics=("parallel",),
            vmem_limit_bytes=vmem_bytes,
        ),
    )(x, side)

    # Tiny final reduction + divide in plain JAX (keeps the grid parallel).
    num = jnp.sum(parts[:, 0, 0])
    den = jnp.sum(parts[:, 0, 1])
    return num / den


def _ldam_loss_ref(x, target, m_list, s=30.0, weight=None):
    """Pure-JAX reference mirroring the PyTorch LDAMLoss module."""
    B, C = x.shape
    xf = x.astype(jnp.float32)
    onehot = jax.nn.one_hot(target, C, dtype=jnp.float32)
    batch_m = (onehot @ m_list.astype(jnp.float32)).reshape(B, 1)
    out = jnp.where(onehot > 0.5, xf - batch_m, xf)
    z = jnp.float32(s) * out
    logp = jax.nn.log_softmax(z, axis=1)
    per_loss = -jnp.sum(logp * onehot, axis=1)
    if weight is None:
        return jnp.mean(per_loss)
    w_t = weight.astype(jnp.float32)[target]
    return jnp.sum(per_loss * w_t) / jnp.sum(w_t)


if __name__ == "__main__":
    key = jax.random.PRNGKey(0)
    kx, kt, kw, kx2, kt2 = jax.random.split(key, 5)

    C = 16
    max_m, s = 0.5, 30.0

    # Deterministic class-frequency list (imbalanced), as in __init__.
    cls_num_list = np.array([1000 // (i + 1) for i in range(C)], dtype=np.float64)
    m_np = 1.0 / np.sqrt(np.sqrt(cls_num_list))
    m_np = m_np * (max_m / np.max(m_np))
    m_list = jnp.asarray(m_np, dtype=jnp.float32)

    # Case 1: f32 logits, weight=None (mean reduction), B divisible by 8.
    B1 = 8
    x1 = jax.random.normal(kx, (B1, C), dtype=jnp.float32)
    t1 = jax.random.randint(kt, (B1,), 0, C, dtype=jnp.int32)
    loss1 = jax.block_until_ready(ldam_loss(x1, t1, m_list, s=s, weight=None))
    ref1 = _ldam_loss_ref(x1, t1, m_list, s=s, weight=None)
    np.testing.assert_allclose(np.asarray(loss1), np.asarray(ref1), rtol=1e-5, atol=1e-5)

    # Case 2: ragged batch (exercises in-kernel tail masking, 2 grid tiles)
    # with class weights.
    B2 = 10
    x2 = jax.random.normal(kx2, (B2, C), dtype=jnp.float32)
    t2 = jax.random.randint(kt2, (B2,), 0, C, dtype=jnp.int32)
    w2 = jax.random.uniform(kw, (C,), dtype=jnp.float32, minval=0.5, maxval=1.5)
    loss2 = jax.block_until_ready(ldam_loss(x2, t2, m_list, s=s, weight=w2))
    ref2 = _ldam_loss_ref(x2, t2, m_list, s=s, weight=w2)
    np.testing.assert_allclose(np.asarray(loss2), np.asarray(ref2), rtol=1e-5, atol=1e-5)

    # Case 3: bf16 logits shipped natively from HBM, upcast inside the kernel.
    x3 = x1.astype(jnp.bfloat16)
    loss3 = jax.block_until_ready(ldam_loss(x3, t1, m_list, s=s, weight=None))
    ref3 = _ldam_loss_ref(x3, t1, m_list, s=s, weight=None)
    np.testing.assert_allclose(np.asarray(loss3), np.asarray(ref3), rtol=1e-4, atol=1e-4)

    print("KERNEL_OK")
</pallas_src>

<mosaic_0001>
module attributes {stable_mosaic.version = 11 : i64} {
  func.func @kernel(%arg0: i32, %arg1: memref<8x16xf32, #tpu.memory_space<vmem>>, %arg2: memref<8x4xf32, #tpu.memory_space<vmem>>, %arg3: memref<1x8x128xf32, #tpu.memory_space<vmem>>) attributes {dimension_semantics = [#tpu.dimension_semantics<parallel>], iteration_bounds = array<i64: 1>, scalar_prefetch = 0 : i64, scratch_operands = 0 : i64, tpu.core_type = #tpu.core_type<tc>, window_params = [{transform_indices = @transform_0, window_bounds = array<i64: 8, 16>}, {transform_indices = @transform_1, window_bounds = array<i64: 8, 4>}, {transform_indices = @transform_2, window_bounds = array<i64: 1, 8, 128>}]} {
    %c0 = arith.constant 0 : index
    %c0_0 = arith.constant 0 : index
    %0 = vector.load %arg1[%c0, %c0_0] : memref<8x16xf32, #tpu.memory_space<vmem>>, vector<8x16xf32>
    %c0_1 = arith.constant 0 : index
    %c0_2 = arith.constant 0 : index
    %1 = vector.load %arg2[%c0_1, %c0_2] : memref<8x4xf32, #tpu.memory_space<vmem>>, vector<8x4xf32>
    %2 = vector.extract_strided_slice %1 {offsets = [0, 0], sizes = [8, 1], strides = [1, 1]} : vector<8x4xf32> to vector<8x1xf32>
    %3 = arith.fptosi %2 : vector<8x1xf32> to vector<8x1xi32>
    %4 = vector.extract_strided_slice %1 {offsets = [0, 1], sizes = [8, 1], strides = [1, 1]} : vector<8x4xf32> to vector<8x1xf32>
    %5 = vector.extract_strided_slice %1 {offsets = [0, 2], sizes = [8, 1], strides = [1, 1]} : vector<8x4xf32> to vector<8x1xf32>
    %6 = vector.extract_strided_slice %1 {offsets = [0, 3], sizes = [8, 1], strides = [1, 1]} : vector<8x4xf32> to vector<8x1xf32>
    %7 = tpu.iota {dimensions = array<i32: 1>} : vector<8x16xi32>
    %8 = vector.broadcast %3 : vector<8x1xi32> to vector<8x16xi32>
    %9 = arith.cmpi eq, %7, %8 : vector<8x16xi32>
    %10 = vector.broadcast %4 : vector<8x1xf32> to vector<8x16xf32>
    %11 = arith.subf %0, %10 : vector<8x16xf32>
    %12 = arith.select %9, %11, %0 : vector<8x16xi1>, vector<8x16xf32>
    %cst = arith.constant 3.000000e+01 : f32
    %13 = vector.broadcast %cst : f32 to vector<8x16xf32>
    %14 = arith.mulf %12, %13 : vector<8x16xf32>
    %cst_3 = arith.constant dense<0xFF800000> : vector<8xf32>
    %15 = vector.multi_reduction <maximumf>, %14, %cst_3 [1] : vector<8x16xf32> to vector<8xf32>
    %16 = vector.shape_cast %15 : vector<8xf32> to vector<8x1xf32>
    %17 = vector.broadcast %16 : vector<8x1xf32> to vector<8x16xf32>
    %18 = arith.subf %14, %17 : vector<8x16xf32>
    %19 = math.exp %18 : vector<8x16xf32>
    %cst_4 = arith.constant dense<0.000000e+00> : vector<8xf32>
    %20 = vector.multi_reduction <add>, %19, %cst_4 [1] : vector<8x16xf32> to vector<8xf32>
    %21 = vector.shape_cast %20 : vector<8xf32> to vector<8x1xf32>
    %22 = math.log %21 : vector<8x1xf32>
    %23 = arith.addf %22, %16 : vector<8x1xf32>
    %24 = arith.subf %23, %5 : vector<8x1xf32>
    %c8_i32 = arith.constant 8 : i32
    %25 = arith.muli %arg0, %c8_i32 : i32
    %26 = tpu.iota {dimensions = array<i32: 0>} : vector<8x1xi32>
    %27 = vector.broadcast %25 : i32 to vector<8x1xi32>
    %28 = arith.addi %27, %26 : vector<8x1xi32>
    %c8_i32_5 = arith.constant 8 : i32
    %29 = vector.broadcast %c8_i32_5 : i32 to vector<8x1xi32>
    %30 = arith.cmpi slt, %28, %29 : vector<8x1xi32>
    %31 = arith.mulf %24, %6 : vector<8x1xf32>
    %cst_6 = arith.constant 0.000000e+00 : f32
    %32 = vector.broadcast %cst_6 : f32 to vector<8x1xf32>
    %33 = arith.select %30, %31, %32 : vector<8x1xi1>, vector<8x1xf32>
    %34 = vector.shape_cast %33 : vector<8x1xf32> to vector<1x8x1xf32>
    %cst_7 = arith.constant dense<0.000000e+00> : vector<1xf32>
    %35 = vector.multi_reduction <add>, %34, %cst_7 [1, 2] : vector<1x8x1xf32> to vector<1xf32>
    %36 = vector.shape_cast %35 : vector<1xf32> to vector<1x1x1xf32>
    %37 = vector.extract %36[0, 0, 0] : f32 from vector<1x1x1xf32>
    %cst_8 = arith.constant 0.000000e+00 : f32
    %38 = vector.broadcast %cst_8 : f32 to vector<8x1xf32>
    %39 = arith.select %30, %6, %38 : vector<8x1xi1>, vector<8x1xf32>
    %40 = vector.shape_cast %39 : vector<8x1xf32> to vector<1x8x1xf32>
    %cst_9 = arith.constant dense<0.000000e+00> : vector<1xf32>
    %41 = vector.multi_reduction <add>, %40, %cst_9 [1, 2] : vector<1x8x1xf32> to vector<1xf32>
    %42 = vector.shape_cast %41 : vector<1xf32> to vector<1x1x1xf32>
    %43 = vector.extract %42[0, 0, 0] : f32 from vector<1x1x1xf32>
    %44 = tpu.iota {dimensions = array<i32: 1>} : vector<8x128xi32>
    %c0_i32 = arith.constant 0 : i32
    %45 = vector.broadcast %c0_i32 : i32 to vector<8x128xi32>
    %46 = arith.cmpi eq, %44, %45 : vector<8x128xi32>
    %c1_i32 = arith.constant 1 : i32
    %47 = vector.broadcast %c1_i32 : i32 to vector<8x128xi32>
    %48 = arith.cmpi eq, %44, %47 : vector<8x128xi32>
    %cst_10 = arith.constant 0.000000e+00 : f32
    %49 = vector.broadcast %43 : f32 to vector<8x128xf32>
    %50 = vector.broadcast %cst_10 : f32 to vector<8x128xf32>
    %51 = arith.select %48, %49, %50 : vector<8x128xi1>, vector<8x128xf32>
    %52 = vector.broadcast %37 : f32 to vector<8x128xf32>
    %53 = arith.select %46, %52, %51 : vector<8x128xi1>, vector<8x128xf32>
    %c0_11 = arith.constant 0 : index
    %c0_12 = arith.constant 0 : index
    %c0_13 = arith.constant 0 : index
    %54 = vector.load %arg3[%c0_11, %c0_12, %c0_13] : memref<1x8x128xf32, #tpu.memory_space<vmem>>, vector<1x8x128xf32>
    %55 = vector.shape_cast %54 : vector<1x8x128xf32> to vector<8x128xf32>
    %56 = vector.shape_cast %53 : vector<8x128xf32> to vector<1x8x128xf32>
    tpu.vector_store %arg3[%c0_11, %c0_12, %c0_13], %56 {strides = array<i32>} : memref<1x8x128xf32, #tpu.memory_space<vmem>>, vector<1x8x128xf32>,
    return
  }
  func.func @transform_0(%arg0: i32) -> (i32, i32) {
    %c0_i32 = arith.constant 0 : i32
    %c0_i32_0 = arith.constant 0 : i32
    return %arg0, %c0_i32 : i32, i32
  }
  func.func @transform_1(%arg0: i32) -> (i32, i32) {
    %c0_i32 = arith.constant 0 : i32
    %c0_i32_0 = arith.constant 0 : i32
    return %arg0, %c0_i32 : i32, i32
  }
  func.func @transform_2(%arg0: i32) -> (i32, i32, i32) {
    %c0_i32 = arith.constant 0 : i32
    %c0_i32_0 = arith.constant 0 : i32
    %c0_i32_1 = arith.constant 0 : i32
    return %arg0, %c0_i32, %c0_i32_0 : i32, i32, i32
  }
}

</mosaic_0001>

<bundles_post_ra>
// kernel: tpu_custom_call.1
= control target key start
LH: loop header
LB: loop body
LE: loop exit
PB: predicated region body
PF: predicated region fallthrough
CT: control target
= control target key end

     0   :  { %s192_s0 = inlined_call_operand.vmem [shape: f32[8,16], index: 0, kind: input, shape index: {}]   ;;  %s193_s1 = inlined_call_operand.vmem [shape: f32[8,4], index: 1, kind: input, shape index: {}]   ;;  %s194_s2 = inlined_call_operand.hbm [shape: f32[1,8,128], index: 2, kind: output, shape index: {}]  }
   0x1   :  { %v13_v0 = vld [vmem:[%s193_s1] sm:$0xff] }
   0x2   :  { %7 = vsyncpa [#allocation3], 0  ;;  %v148_v1 = vmov 1   ;;  %v105_v2 = vtrunc.f32 %v13_v0  ;;  %v149_v4 = vmov 0   ;;  %v15_v5 = vlaneseq  ;;  %v12_v7 = vld [vmem:[%s192_s0] sm:$0xff]  ;;  %s150_s1 = smov 127  }
   0x3   :  { %117 = vset.pattern.permute.xlu0 %v148_v1  ;;  %vm29_vm1 = vcmask 130048   ;;  %s151_s0 = smov 126   ;;  %s152_s13 = smov 125   ;;  %vm58_vm2 = vcmask 7168  }
   0x4   :  { %23 = vperm.xlu0 %117, %v13_v0   ;;  %v106_v3 = vcvt.f32.s32 %v105_v2  ;;  %v175_v8 = vand.u32 127, %v15_v5  ;;  %s153_s15 = smov [#allocation2]  }
   0x5   :  { %s97_s16 = sshll.u32 %s153_s15, 4  ;;  %s98_s16 = int_to_ptr.vmem [resolvable:$true] %s97_s16 }
   0x6   :  { %vm85_vm3 = vcmp.eq.s32.totalorder %v175_v8, 1  ;;  %vm84_vm4 = vcmp.eq.s32.totalorder %v175_v8, 0  ;;  %s124_s18 = scalar_lea.vmem %s98_s16, 128  ;;  %p129_p1 = scmp.lt.s32.totalorder %s98_s16, %s98_s16 }
   0x7   :  { %p125_p0 = scmp.ne.s32.totalorder %s98_s16, %s124_s18  ;;  %p130_p2 = scmp.lt.s32.totalorder %s124_s18, %s124_s18 }
   0x8   :  { %118 = vset.pattern.permute.xlu0 %v149_v4 }
   0x9   :  { %18 = vperm.xlu0 %118, %v106_v3   ;;  %p131_p3 = por %p130_p2, %p129_p1 }
   0xb   :  { %p132_p4 = pnand %p131_p3, %p125_p0 }
   0xd   :  { %119 = vset.pattern.permute.xlu0 %v148_v1 }
  0x83   :  { %v24_v6 = vpop.permute.xlu0 %23 }
  0x84   :  { %v26_v9 = vsub.f32 %v12_v7, %v24_v6 }
  0x88   :  { %v19_v10 = vpop.permute.xlu0 %18 }
  0x89   :  { %vm20_vm0 = vcmp.eq.s32.totalorder %v175_v8, %v19_v10 }
  0x8a   :  { %v27_v11 = vsel %vm20_vm0, %v26_v9, %v12_v7 }
  0x8b   :  { %v28_v12 = vmul.f32 30.0, %v27_v11 }
  0x8d   :  { %v30_v13 = vsel %vm29_vm1, %v28_v12, -inf }
  0x8e   :  { %31 = vmax.xlane.f32.xlu1 %v30_v13 }
 0x11b   :  { %v32_v14 = vpop.xlane.xlu1 %31 }
 0x11c   :  { %v33_v15 = vsub.f32 %v28_v12, %v32_v14 }
 0x11e   :  { %v34_v16 = vmul.f32 1.442695, %v33_v15 }
 0x120   :  { %120 = vpow2.f32 %v34_v16 }
 0x12a   :  { %v121_v17 = vpop.eup %120 }
 0x12b   :  { %v36_v18 = vsel %vm29_vm1, %v121_v17, 0.0 }
 0x12c   :  { %37 = vadd.xlane.f32.xlu1 %v36_v18 }
 0x13d   :  { %49 = vrot.lane.b32.xlu1 %v13_v0, %s150_s1 }
 0x1b9   :  { %v38_v19 = vpop.xlane.xlu1 %37 }
 0x1ba   :  { %122 = vlog2.f32 %v38_v19 }
 0x1bd   :  { %v50_v23 = vpop.permute.xlu1 %49 }
 0x1c4   :  { %v123_v20 = vpop.eup %122 }
 0x1c5   :  { %v40_v21 = vmul.f32 0.6931472, %v123_v20 }
 0x1c7   :  { %v41_v22 = vadd.f32 %v40_v21, %v32_v14 }
 0x1c9   :  { %v42_v24 = vsub.f32 %v41_v22, %v13_v0 }
 0x1cb   :  { %v52_v25 = vmul.f32 %v50_v23, %v42_v24 }
 0x1cd   :  { %55 = vrot.lane.b32.xlu0 %v52_v25, %s151_s0 }
 0x1d1   :  { %71 = vrot.lane.b32.xlu0 %v13_v0, %s152_s13 }
 0x23f   :  { %v56_v26 = vpop.permute.xlu0 %55 }
 0x240   :  { %v59_v27 = vsel %vm58_vm2, %v56_v26, 0.0 }
 0x241   :  { %60 = vadd.xlane.f32.xlu0 %v59_v27 }
 0x243   :  { %v72_v28 = vpop.permute.xlu0 %71 }
 0x244   :  { %v74_v29 = vsel %vm58_vm2, %v72_v28, 0.0 }
 0x245   :  { %75 = vadd.xlane.f32.xlu1 %v74_v29 }
 0x2ce   :  { %v61_v30 = vpop.xlane.xlu0 %60 }
 0x2cf   :  { %v62_v31 = vrot.slane %v61_v30, 4 }
 0x2d1   :  { %v63_v32 = vadd.f32 %v62_v31, %v61_v30 }
 0x2d2   :  { %v76_v33 = vpop.xlane.xlu1 %75 }
 0x2d3   :  { %v64_v34 = vrot.slane %v63_v32, 2  ;;  %v77_v35 = vrot.slane %v76_v33, 4 }
 0x2d5   :  { %v78_v36 = vadd.f32 %v77_v35, %v76_v33  ;;  %v65_v37 = vadd.f32 %v64_v34, %v63_v32 }
 0x2d7   :  { %v79_v38 = vrot.slane %v78_v36, 2  ;;  %v66_v39 = vrot.slane %v65_v37, 1 }
 0x2d9   :  { %v80_v40 = vadd.f32 %v79_v38, %v78_v36  ;;  %v67_v41 = vadd.f32 %v66_v39, %v65_v37 }
 0x2db   :  { %107 = vpush %v67_v41  ;;  %v81_v42 = vrot.slane %v80_v40, 1 }
 0x2dd   :  { %v82_v43 = vadd.f32 %v81_v42, %v80_v40 }
 0x2df   :  { %109 = vpush %v82_v43 }
 0x30c   :  { %s108_s14 = spop %107 }
 0x30d   :  { %v88_v45 = vstv %s108_s14 }
 0x310   :  { %s110_s17 = spop %109 }
 0x311   :  { %v86_v44 = vstv %s110_s17 }
 0x312   :  { %v87_v46 = vsel %vm85_vm3, %v86_v44, 0.0 }
 0x313   :  { %v89_v47 = vsel %vm84_vm4, %v88_v45, %v87_v46 }
 0x314   :  { %90 = vst [vmem:[#allocation2] sm:$0xff] %v89_v47 }
 0x315   :  { %135 = shalt.err (!%p132_p4)
}
 0x316   :  { %s136_s21 = scalar_lea.hbm %s194_s2, 128 }
 0x317   :  { %p137_p5 = scmp.ne.s32.totalorder %s194_s2, %s136_s21  ;;  %p140_p6 = scmp.lt.u32.totalorder %s136_s21, %s194_s2 }
 0x319   :  { %p142_p7 = pnand %p140_p6, %p137_p5 }
 0x31b   :  { %145 = shalt.err (!%p142_p7)
}
 0x31c   :  { %100 = dma.vmem_to_hbm [thread:$0]  %s98_s16, 128, %s194_s2, [#allocation3]  }
 0x31d   :  { %146 = dma.done.wait [#allocation3], 128  }
 0x31e   :  { %147 = vsyncadd [#allocation3], 4294967168 }
 0x31f   :  { %104 = vsyncpa [#allocation3], 1 }

</bundles_post_ra>
